<compile_context>
chip_gen: v7x
topology: tpu7x:2x2x1
jax: 0.10.0
libtpu: 0.0.40
codegen_flags: <defaults>
</compile_context>

<pallas_src>
import jax
import jax.numpy as jnp
from jax import lax
from jax.experimental import pallas as pl
from jax.experimental.pallas import tpu as pltpu


def _down_gemm_kernel(x_ref, w_ref, b_ref, a_ref, o_ref):
    """Fused im2col-GEMM + bias + PReLU for one row block.

    x_ref : (TM, 9*C_in)     im2col rows (compute dtype)
    w_ref : (9*C_in, C_out)  BN-folded weights (compute dtype)
    b_ref : (1, C_out)       BN-folded bias (f32)
    a_ref : (1, C_out)       PReLU slope (f32)
    o_ref : (TM, C_out)      output rows
    """
    acc = jnp.dot(x_ref[...], w_ref[...], preferred_element_type=jnp.float32)
    acc = acc + b_ref[...]                      # f32 bias
    alpha = a_ref[...]                          # f32 slope
    y = jnp.where(acc >= 0, acc, alpha * acc)   # PReLU
    o_ref[...] = y.astype(o_ref.dtype)


def _round_up(v, m):
    return (v + m - 1) // m * m


def down_forward(x, w, b, gamma, beta, mean, var, alpha, eps=1e-5,
                 compute_dtype=None):
    """Fused Conv2d(3x3, stride 2, pad 1, bias) + BatchNorm2d(eval) + PReLU.

    x : (N, C_in, H, W) NCHW; w : (C_out, C_in, 3, 3) OIHW;
    b, gamma, beta, mean, var : (C_out,); alpha : (1,) or (C_out,)
    returns (N, C_out, H_out, W_out) NCHW with H_out = (H-1)//2 + 1.
    """
    # TODO(synk): BatchNorm2d is applied in inference mode (running statistics
    # folded into the conv); PyTorch training-mode batch statistics are not
    # reproduced.
    N, C_in, H, W = x.shape
    C_out = w.shape[0]
    H_out = (H - 1) // 2 + 1          # matches nn.Conv2d(k=3, s=2, p=1), odd OK
    W_out = (W - 1) // 2 + 1
    M = N * H_out * W_out
    K = 9 * C_in
    if compute_dtype is None:
        compute_dtype = x.dtype
    compute_dtype = jnp.dtype(compute_dtype)
    out_dtype = x.dtype

    # --- fold BatchNorm into conv weight / bias (tiny, parameter-only, f32) ---
    f32 = jnp.float32
    scale = gamma.astype(f32) / jnp.sqrt(var.astype(f32) + eps)        # (C_out,)
    w_f = w.astype(f32) * scale[:, None, None, None]                    # OIHW
    b_f = (b.astype(f32) - mean.astype(f32)) * scale + beta.astype(f32)
    # (kh, kw, C_in, C_out) -> (9*C_in, C_out): matches the im2col column order.
    w_col = jnp.transpose(w_f, (2, 3, 1, 0)).reshape(K, C_out).astype(compute_dtype)
    b_k = b_f.reshape(1, C_out)                                          # f32
    alpha_f = jnp.asarray(alpha, f32).reshape(-1)
    if alpha_f.size == 1:
        alpha_f = jnp.broadcast_to(alpha_f, (C_out,))
    a_k = alpha_f.reshape(1, C_out)                                      # f32

    # --- im2col slab built host-side in one fused XLA pass: each of the nine
    #     stride-2/pad-1 taps becomes a contiguous channel group, so the kernel
    #     is a single lane-dense GEMM with K = 9*C_in and no in-kernel copies.
    # TODO(synk): the NCHW<->NHWC transposes around the block are interface
    # plumbing; keeping the network NHWC end-to-end would remove those passes.
    x_nhwc = jnp.transpose(x, (0, 2, 3, 1))
    xp = jnp.pad(x_nhwc, ((0, 0), (1, 1), (1, 1), (0, 0)))
    taps = [xp[:, kh:kh + 2 * H_out:2, kw:kw + 2 * W_out:2, :]
            for kh in range(3) for kw in range(3)]
    x_col = jnp.concatenate(taps, axis=-1).reshape(M, K).astype(compute_dtype)

    # --- generation-aware row-block sizing and VMEM limit (feedback #5/#6) ---
    try:
        vmem_phys = int(pltpu.get_tpu_info().vmem_capacity_bytes)
    except Exception:
        vmem_phys = 64 << 20                          # v7x-safe fallback
    vmem_limit = min(vmem_phys - vmem_phys // 8, 96 << 20)   # 56 MiB on v7x
    cb = jnp.dtype(compute_dtype).itemsize
    ob = jnp.dtype(out_dtype).itemsize
    # per-row VMEM bytes, including lane padding (last dim rounds up to 128)
    row_bytes = _round_up(K, 128) * cb + _round_up(C_out, 128) * ob
    tile_budget = vmem_limit // 2                     # headroom: weights, scratch
    tm = max(8, tile_budget // (2 * row_bytes))       # x2 = double-buffered tiles
    tm = min(tm, 4096, M)
    if M >= 16:                                       # >=2 blocks for dual-TC v7x
        tm = min(tm, _round_up(pl.cdiv(M, 2), 8))
    if tm < M:
        tm = max(8, (tm // 8) * 8)                    # sublane-aligned block rows
    else:
        tm = M
    grid = (pl.cdiv(M, tm),)

    # Channels sit on the lane dim (lane-dense for realistic C_out >= 128).
    y2d = pl.pallas_call(
        _down_gemm_kernel,
        out_shape=jax.ShapeDtypeStruct((M, C_out), out_dtype),
        grid=grid,
        in_specs=[
            pl.BlockSpec((tm, K), lambda i: (i, 0)),
            pl.BlockSpec((K, C_out), lambda i: (0, 0)),
            pl.BlockSpec((1, C_out), lambda i: (0, 0)),
            pl.BlockSpec((1, C_out), lambda i: (0, 0)),
        ],
        out_specs=pl.BlockSpec((tm, C_out), lambda i: (i, 0)),
        compiler_params=pltpu.CompilerParams(
            dimension_semantics=("parallel",),
            vmem_limit_bytes=int(vmem_limit)),
    )(x_col, w_col, b_k, a_k)

    y = y2d.reshape(N, H_out, W_out, C_out)
    return jnp.transpose(y, (0, 3, 1, 2))             # back to NCHW


def _down_reference(x, w, b, gamma, beta, mean, var, alpha, eps=1e-5):
    y = lax.conv_general_dilated(
        x, w, window_strides=(2, 2), padding=((1, 1), (1, 1)),
        dimension_numbers=("NCHW", "OIHW", "NCHW"))
    y = y + b[None, :, None, None]
    y = (y - mean[None, :, None, None]) * (
        gamma[None, :, None, None] / jnp.sqrt(var[None, :, None, None] + eps)
    ) + beta[None, :, None, None]
    a = jnp.asarray(alpha, y.dtype).reshape(-1)
    if a.size == 1:
        a = jnp.broadcast_to(a, (y.shape[1],))
    a = a[None, :, None, None]
    return jnp.where(y >= 0, y, a * y)


if __name__ == "__main__":
    key = jax.random.PRNGKey(0)
    kx, kw, kb, kg, kbe, km, kv = jax.random.split(key, 7)

    N, C_in, C_out, H, W = 2, 4, 8, 16, 16
    x = jax.random.normal(kx, (N, C_in, H, W), dtype=jnp.float32)
    w = jax.random.normal(kw, (C_out, C_in, 3, 3), dtype=jnp.float32) * 0.2
    b = jax.random.normal(kb, (C_out,), dtype=jnp.float32) * 0.1
    gamma = jax.random.uniform(kg, (C_out,), minval=0.5, maxval=1.5)
    beta = jax.random.normal(kbe, (C_out,), dtype=jnp.float32) * 0.1
    mean = jax.random.normal(km, (C_out,), dtype=jnp.float32) * 0.1
    var = jax.random.uniform(kv, (C_out,), minval=0.5, maxval=1.5)
    alpha = jnp.array([0.25], dtype=jnp.float32)   # nn.PReLU() default slope

    ref = _down_reference(x, w, b, gamma, beta, mean, var, alpha)

    # f32 path (tight tolerance)
    out = down_forward(x, w, b, gamma, beta, mean, var, alpha)
    out = jax.block_until_ready(out)
    assert out.shape == (N, C_out, H // 2, W // 2), out.shape
    assert jnp.allclose(out, ref, atol=1e-3, rtol=1e-3), float(
        jnp.max(jnp.abs(out - ref)))

    # bf16-operand MXU path (f32 accumulation / post-ops), looser tolerance
    out_bf16 = down_forward(x, w, b, gamma, beta, mean, var, alpha,
                            compute_dtype=jnp.bfloat16)
    out_bf16 = jax.block_until_ready(out_bf16)
    assert jnp.allclose(out_bf16, ref, atol=1e-1, rtol=1e-1), float(
        jnp.max(jnp.abs(out_bf16 - ref)))

    print("KERNEL_OK")
</pallas_src>

<mosaic_0001>
module attributes {stable_mosaic.version = 11 : i64} {
  func.func @_down_gemm_kernel(%arg0: i32, %arg1: memref<64x36xf32, #tpu.memory_space<vmem>>, %arg2: memref<36x8xf32, #tpu.memory_space<vmem>>, %arg3: memref<1x8xf32, #tpu.memory_space<vmem>>, %arg4: memref<1x8xf32, #tpu.memory_space<vmem>>, %arg5: memref<64x8xf32, #tpu.memory_space<vmem>>) attributes {dimension_semantics = [#tpu.dimension_semantics<parallel>], iteration_bounds = array<i64: 2>, scalar_prefetch = 0 : i64, scratch_operands = 0 : i64, tpu.core_type = #tpu.core_type<tc>, window_params = [{transform_indices = @transform_0, window_bounds = array<i64: 64, 36>}, {pipeline_mode = #tpu.pipeline_mode<synchronous>, transform_indices = @transform_1, window_bounds = array<i64: 36, 8>}, {pipeline_mode = #tpu.pipeline_mode<synchronous>, transform_indices = @transform_2, window_bounds = array<i64: 1, 8>}, {pipeline_mode = #tpu.pipeline_mode<synchronous>, transform_indices = @transform_3, window_bounds = array<i64: 1, 8>}, {transform_indices = @transform_4, window_bounds = array<i64: 64, 8>}]} {
    %c0 = arith.constant 0 : index
    %c0_0 = arith.constant 0 : index
    %0 = vector.load %arg1[%c0, %c0_0] : memref<64x36xf32, #tpu.memory_space<vmem>>, vector<64x36xf32>
    %c0_1 = arith.constant 0 : index
    %c0_2 = arith.constant 0 : index
    %1 = vector.load %arg2[%c0_1, %c0_2] : memref<36x8xf32, #tpu.memory_space<vmem>>, vector<36x8xf32>
    %cst = arith.constant dense<0.000000e+00> : vector<64x8xf32>
    %2 = tpu.matmul %0, %1, %cst {dimension_numbers = #tpu.dot_dimension_numbers<[1], [0], [0], [1], [0, 0, 1, 1], [], []>} : vector<64x36xf32>, vector<36x8xf32>, vector<64x8xf32> -> vector<64x8xf32>
    %c0_3 = arith.constant 0 : index
    %c0_4 = arith.constant 0 : index
    %3 = vector.load %arg3[%c0_3, %c0_4] : memref<1x8xf32, #tpu.memory_space<vmem>>, vector<1x8xf32>
    %4 = vector.broadcast %3 : vector<1x8xf32> to vector<64x8xf32>
    %5 = arith.addf %2, %4 : vector<64x8xf32>
    %c0_5 = arith.constant 0 : index
    %c0_6 = arith.constant 0 : index
    %6 = vector.load %arg4[%c0_5, %c0_6] : memref<1x8xf32, #tpu.memory_space<vmem>>, vector<1x8xf32>
    %cst_7 = arith.constant 0.000000e+00 : f32
    %7 = vector.broadcast %cst_7 : f32 to vector<64x8xf32>
    %8 = arith.cmpf oge, %5, %7 : vector<64x8xf32>
    %9 = vector.broadcast %6 : vector<1x8xf32> to vector<64x8xf32>
    %10 = arith.mulf %9, %5 : vector<64x8xf32>
    %11 = arith.select %8, %5, %10 : vector<64x8xi1>, vector<64x8xf32>
    %c0_8 = arith.constant 0 : index
    %c0_9 = arith.constant 0 : index
    %12 = vector.load %arg5[%c0_8, %c0_9] : memref<64x8xf32, #tpu.memory_space<vmem>>, vector<64x8xf32>
    tpu.vector_store %arg5[%c0_8, %c0_9], %11 {strides = array<i32>} : memref<64x8xf32, #tpu.memory_space<vmem>>, vector<64x8xf32>,
    return
  }
  func.func @transform_0(%arg0: i32) -> (i32, i32) {
    %c0_i32 = arith.constant 0 : i32
    %c0_i32_0 = arith.constant 0 : i32
    return %arg0, %c0_i32 : i32, i32
  }
  func.func @transform_1(%arg0: i32) -> (i32, i32) {
    %c0_i32 = arith.constant 0 : i32
    %c0_i32_0 = arith.constant 0 : i32
    %c0_i32_1 = arith.constant 0 : i32
    return %c0_i32, %c0_i32_0 : i32, i32
  }
  func.func @transform_2(%arg0: i32) -> (i32, i32) {
    %c0_i32 = arith.constant 0 : i32
    %c0_i32_0 = arith.constant 0 : i32
    %c0_i32_1 = arith.constant 0 : i32
    return %c0_i32, %c0_i32_0 : i32, i32
  }
  func.func @transform_3(%arg0: i32) -> (i32, i32) {
    %c0_i32 = arith.constant 0 : i32
    %c0_i32_0 = arith.constant 0 : i32
    %c0_i32_1 = arith.constant 0 : i32
    return %c0_i32, %c0_i32_0 : i32, i32
  }
  func.func @transform_4(%arg0: i32) -> (i32, i32) {
    %c0_i32 = arith.constant 0 : i32
    %c0_i32_0 = arith.constant 0 : i32
    return %arg0, %c0_i32 : i32, i32
  }
}

</mosaic_0001>

<bundles_post_ra>
// kernel: tpu_custom_call.1
= control target key start
LH: loop header
LB: loop body
LE: loop exit
PB: predicated region body
PF: predicated region fallthrough
CT: control target
= control target key end

     0   :  { %s563_s15 = smov 0   ;;  %s638_s0 = inlined_call_operand.vmem [shape: f32[128,36], index: 0, kind: input, shape index: {}]   ;;  %s639_s1 = inlined_call_operand.vmem [shape: f32[36,8], index: 1, kind: input, shape index: {}]   ;;  %s640_s2 = inlined_call_operand.vmem [shape: f32[1,8], index: 2, kind: input, shape index: {}]   ;;  %s641_s3 = inlined_call_operand.vmem [shape: f32[1,8], index: 3, kind: input, shape index: {}]   ;;  %s642_s4 = inlined_call_operand.vmem [shape: f32[128,8], index: 4, kind: output, shape index: {}]  }
   0x1 LB: > { %s451_s16 = sadd.s32 4294967295, %s536_s15   ;;  %p455_p0 = scmp.ge.s32.totalorder %s536_s15, 1  ;;  %s536_s15 = sphi %s563_s15, %s14_s15  }
   0x2   : > { %p163_p1 = scmp.lt.s32.totalorder %s536_s15, 3 }
   0x4   : > { %p164_p2 = pnand %p455_p0, %p163_p1 }
   0x5   : > { %v209_v0 = vld [vmem:[%s639_s1] sm:$0xff] (!%p164_p2)  ;;  %v210_v1 = vld [vmem:[%s639_s1 + $0x8] sm:$0xff] (!%p164_p2)  ;;  %v211_v2 = vld [vmem:[%s639_s1 + $0x10] sm:$0xff] (!%p164_p2)  ;;  %s456_s23 = sshll.u32 (!%p164_p2), %s451_s16, 3  ;;  %vm246_vm0 = vcmask (!%p164_p2), 1043456   ;;  %vm221_vm1 = vcmask (!%p164_p2), 293888  }
   0x6   : > { %167 = sbr.rel (%p164_p2) target bundleno = 243 (0xf3), region = 36  ;;  %v508_v3 = vpack.c.bf16 (!%p164_p2), %v210_v1, %v209_v0  ;;  %v212_v4 = vld [vmem:[%s639_s1 + $0x18] sm:$0xff] (!%p164_p2)  ;;  %p190_p3 = scmp.lt.s32.totalorder (!%p164_p2), %s456_s23, 15  ;;  %v213_v6 = vld [vmem:[%s639_s1 + $0x20] sm:$0xf] (!%p164_p2)  ;;  %vm386_vm2 = vcmask (!%p164_p2), 64512  }
   0x7   : > { %v512_v5 = vpack.c.bf16 (!%p164_p2), %v212_v4, %v211_v2  ;;  %v460_v15 = vld [vmem:[%s640_s2] ss:$0 sm:$0xff] (!%p164_p2) }
   0x8   : > { %509 = vmatprep.subr.bf16.mxu0 (!%p164_p2), %v508_v3  ;;  %516 = vmatprep.subr.bf16.mxu1 (!%p164_p2), %v508_v3  ;;  %v470_v17 = vld [vmem:[%s641_s3] ss:$0 sm:$0xff] (!%p164_p2) }
   0x9   : > { %511 = vmatpush3.bf16.msra.mxu0 (!%p164_p2), %v508_v3  ;;  %519 = vmatpush3.bf16.msra.mxu1 (!%p164_p2), %v508_v3 }
   0xa   : > { %513 = vmatprep.subr.bf16.mxu0 (!%p164_p2), %v512_v5  ;;  %517 = vmatprep.subr.bf16.mxu1 (!%p164_p2), %v512_v5 }
   0xd   : > { %s644_s23 = smov (!%p190_p3, %s456_s23), 15  ;;  %515 = vmatpush3.bf16.msra.mxu0 %v512_v5  ;;  %520 = vmatpush3.bf16.msra.mxu1 %v512_v5 }
   0xe   : > { %s457_s26 = sshll.u32 %s644_s23, 3  ;;  %494 = vmatprep.subr.msk.mxu0 %vm246_vm0, %v213_v6  ;;  %518 = vmatprep.subr.msk.mxu1 %vm246_vm0, %v213_v6 }
   0xf   : > { %s193_s5 = scalar_lea.vmem %s638_s0, %s457_s26  ;;  %s617_s12 = scalar_lea.vmem %s642_s4, %s457_s26 }
  0x10   : > { %v201_v7 = vld [vmem:[%s193_s5] sm:$0xff]  ;;  %v202_v9 = vld [vmem:[%s193_s5 + $0x8] sm:$0xff]  ;;  %v203_v11 = vld [vmem:[%s193_s5 + $0x10] sm:$0xff] }
  0x11   : > { %v205_v8 = vld [vmem:[%s193_s5 + $0x20] sm:$0xff]  ;;  %496 = vmatprep.mubr.msk.f32.mxu0 %vm221_vm1, %v201_v7  ;;  %v206_v10 = vld [vmem:[%s193_s5 + $0x28] sm:$0xff]  ;;  %v207_v12 = vld [vmem:[%s193_s5 + $0x30] sm:$0xff]  ;;  %495 = vmatpush3.msk.msra.mxu0 %vm246_vm0, %v213_v6 }
  0x12   : > { %502 = vmatprep.mubr.msk.f32.mxu1 %vm221_vm1, %v205_v8  ;;  %521 = vmatpush3.msk.msra.mxu1 %vm246_vm0, %v213_v6  ;;  %v204_v13 = vld [vmem:[%s193_s5 + $0x18] sm:$0xff] }
  0x13   : > { %497 = vmatmul.mubr.msk.f32.vlgmr.msra.gmra.mrb[0].mxu0 %vm221_vm1, %v202_v9  ;;  %503 = vmatmul.mubr.msk.f32.vlgmr.msra.gmra.mrb[0].mxu1 %vm221_vm1, %v206_v10  ;;  %v208_v14 = vld [vmem:[%s193_s5 + $0x38] sm:$0xff] }
  0x14   : > { %499 = vmatprep.mubr.msk.f32.mxu0 %vm221_vm1, %v203_v11  ;;  %505 = vmatprep.mubr.msk.f32.mxu1 %vm221_vm1, %v207_v12 }
  0x17   : > { %500 = vmatmul.mubr.msk.f32.gmra.mrb[2].mxu0 %vm221_vm1, %v204_v13  ;;  %506 = vmatmul.mubr.msk.f32.gmra.mrb[2].mxu1 %vm221_vm1, %v208_v14 }
  0xe6   : > { %v498_v16 = vpop.f32.mrb[0].mxu0  ;;  %v504_v18 = vpop.f32.mrb[0].mxu1 }
  0xe7   : > { %v322_v19 = vadd.f32 %v498_v16, %v460_v15  ;;  %v342_v20 = vadd.f32 %v504_v18, %v460_v15  ;;  %v316_v21 = vpop.f32.mrb[1].mxu0  ;;  %v336_v22 = vpop.f32.mrb[1].mxu1 }
  0xe8   : > { %v317_v23 = vadd.f32 %v460_v15, %v316_v21  ;;  %v337_v24 = vadd.f32 %v460_v15, %v336_v22 }
  0xe9   : > { %vm357_vm3 = vcmp.ge.f32.partialorder %v322_v19, 0.0  ;;  %v371_v25 = vmul.f32 %v470_v17, %v322_v19  ;;  %vm361_vm4 = vcmp.ge.f32.partialorder %v342_v20, 0.0  ;;  %v375_v26 = vmul.f32 %v470_v17, %v342_v20 }
  0xea   : > { %vm356_vm5 = vcmp.ge.f32.partialorder %v317_v23, 0.0  ;;  %v370_v27 = vmul.f32 %v470_v17, %v317_v23  ;;  %vm360_vm6 = vcmp.ge.f32.partialorder %v337_v24, 0.0  ;;  %v374_v28 = vmul.f32 %v470_v17, %v337_v24  ;;  %v501_v29 = vpop.f32.mrb[2].mxu0  ;;  %v507_v30 = vpop.f32.mrb[2].mxu1 }
  0xeb   : > { %v379_v31 = vsel %vm357_vm3, %v322_v19, %v371_v25  ;;  %v383_v32 = vsel %vm361_vm4, %v342_v20, %v375_v26  ;;  %v332_v33 = vadd.f32 %v501_v29, %v460_v15  ;;  %v352_v34 = vadd.f32 %v507_v30, %v460_v15  ;;  %v326_v35 = vpop.f32.mrb[3].mxu0  ;;  %v346_v36 = vpop.f32.mrb[3].mxu1 }
  0xec   : > { %388 = vst.msk [vmem:[%s617_s12 + $0x8] sm:$0xff] %vm386_vm2, %v379_v31  ;;  %392 = vst.msk [vmem:[%s617_s12 + $0x28] sm:$0xff] %vm386_vm2, %v383_v32  ;;  %v378_v37 = vsel %vm356_vm5, %v317_v23, %v370_v27  ;;  %v382_v38 = vsel %vm360_vm6, %v337_v24, %v374_v28  ;;  %v327_v39 = vadd.f32 %v460_v15, %v326_v35 }
  0xed   : > { %v347_v40 = vadd.f32 %v460_v15, %v346_v36  ;;  %387 = vst.msk [vmem:[%s617_s12] sm:$0xff] %vm386_vm2, %v378_v37  ;;  %391 = vst.msk [vmem:[%s617_s12 + $0x20] sm:$0xff] %vm386_vm2, %v382_v38  ;;  %vm359_vm7 = vcmp.ge.f32.partialorder %v332_v33, 0.0  ;;  %v373_v41 = vmul.f32 %v470_v17, %v332_v33  ;;  %vm363_vm8 = vcmp.ge.f32.partialorder %v352_v34, 0.0 }
  0xee   : > { %v377_v42 = vmul.f32 %v470_v17, %v352_v34  ;;  %vm358_vm9 = vcmp.ge.f32.partialorder %v327_v39, 0.0  ;;  %v372_v43 = vmul.f32 %v470_v17, %v327_v39 }
  0xef   : > { %vm362_vm10 = vcmp.ge.f32.partialorder %v347_v40, 0.0  ;;  %v376_v44 = vmul.f32 %v470_v17, %v347_v40  ;;  %v381_v45 = vsel %vm359_vm7, %v332_v33, %v373_v41 }
  0xf0   : > { %v385_v46 = vsel %vm363_vm8, %v352_v34, %v377_v42  ;;  %390 = vst.msk [vmem:[%s617_s12 + $0x18] sm:$0xff] %vm386_vm2, %v381_v45  ;;  %v380_v47 = vsel %vm358_vm9, %v327_v39, %v372_v43 }
  0xf1   : > { %394 = vst.msk [vmem:[%s617_s12 + $0x38] sm:$0xff] %vm386_vm2, %v385_v46  ;;  %v384_v48 = vsel %vm362_vm10, %v347_v40, %v376_v44  ;;  %389 = vst.msk [vmem:[%s617_s12 + $0x10] sm:$0xff] %vm386_vm2, %v380_v47 }
  0xf2   : > { %393 = vst.msk [vmem:[%s617_s12 + $0x30] sm:$0xff] %vm386_vm2, %v384_v48 }
  0xf3 PF: > { %s14_s15 = sadd.s32 1, %s536_s15  }
  0xf4   : > { %p11_p4 = scmp.ge.s32.totalorder %s14_s15, 4  }
  0xf6   :  { %13 = sbr.rel (!%p11_p4) target bundleno = 1 (0x1), region = 66 }

</bundles_post_ra>
